<compile_context>
chip_gen: v7x
topology: tpu7x:2x2x1
jax: 0.10.0
libtpu: 0.0.40
codegen_flags: <defaults>
</compile_context>

<pallas_src>
import jax
import jax.numpy as jnp
from jax.experimental import pallas as pl
from jax.experimental.pallas import tpu as pltpu

L_IN = 6          # input length; conv1(k=2) -> 5, conv2(k=2) -> 4
L1 = 5            # length after conv1
L2 = 4            # length after conv2 (feeds Linear(4, 32))
HID = 32
OUT = 5
LANE = 128
DEFAULT_TB = 32768   # target batch tile (lanes); working set per step ~10 MiB


def _round_up(n, m):
    return (n + m - 1) // m * m


def _plan_tiles(batch, batch_tile):
    """Pick (tile_lanes, n_tiles, padded_batch).

    - tile is a multiple of 128 lanes and ~batch_tile at most,
    - padding is bounded by one lane-group per tile (adaptive tile size),
    - n_tiles >= 2 whenever batch spans more than one lane-group, so the
      "parallel" grid axis can shard across both v7x TensorCores.
    """
    assert batch_tile >= LANE and batch_tile % LANE == 0
    b_ceil = _round_up(max(batch, 1), LANE)
    n_tiles = -(-b_ceil // batch_tile)
    if n_tiles == 1 and b_ceil > LANE:
        n_tiles = 2
    tb = _round_up(-(-b_ceil // n_tiles), LANE)
    return tb, n_tiles, tb * n_tiles


def conv_sigmoid_kernel(x_ref,   # VMEM (6, TB) f32   input, batch on lanes
                        w_ref,   # VMEM (37, 32) bf16 rows 0:32 = W1 (32,4), rows 32:37 = W2 (5,32)
                        m_ref,   # VMEM (32, 4) f32   col0 = b1, col1[:5] = b2, col2[:6] = conv taps/biases
                        o_ref):  # VMEM (5, TB) f32   output, batch on lanes
    x = x_ref[...]                                   # (6, TB) f32
    m = m_ref[...]                                   # (32, 4) f32

    b1 = m[:, 0:1]                                   # (32, 1)
    b2 = m[0:OUT, 1:2]                               # (5, 1)
    c1w0 = m[0:1, 2:3]
    c1w1 = m[1:2, 2:3]
    c1b = m[2:3, 2:3]
    c2w0 = m[3:4, 2:3]
    c2w1 = m[4:5, 2:3]
    c2b = m[5:6, 2:3]

    # conv1 (1->1 ch, k=2, pad=0) as VPU slice mul-adds, then ReLU   -> (5, TB)
    y = jnp.maximum(c1w0 * x[0:L1, :] + c1w1 * x[1:L_IN, :] + c1b, 0.0)
    # conv2 (k=2) likewise, then ReLU                                -> (4, TB)
    z = jnp.maximum(c2w0 * y[0:L2, :] + c2w1 * y[1:L1, :] + c2b, 0.0)

    w = w_ref[...]                                   # (37, 32) bf16
    w1 = w[0:HID, 0:L2]                              # (32, 4)  bf16
    w2 = w[HID:HID + OUT, :]                         # (5, 32)  bf16

    # linear1: single-pass bf16 MXU, f32 accumulate, ReLU            -> (32, TB)
    h = jnp.dot(w1, z.astype(jnp.bfloat16), preferred_element_type=jnp.float32) + b1
    h = jnp.maximum(h, 0.0)

    # linear2: single-pass bf16 MXU, f32 accumulate                  -> (5, TB)
    o = jnp.dot(w2, h.astype(jnp.bfloat16), preferred_element_type=jnp.float32) + b2

    # sigmoid = 1 / (1 + exp(-o)) : exp on EUP, approx reciprocal on EUP (free slots)
    o_ref[...] = pl.reciprocal(1.0 + jnp.exp(-o), approx=True)


def _pack_params(params):
    """Pack weights into one bf16 slab and biases/conv taps into one f32 slab."""
    w1 = params["lin1_w"].astype(jnp.bfloat16)                       # (32, 4)
    w2 = params["lin2_w"].astype(jnp.bfloat16)                       # (5, 32)
    w_slab = jnp.zeros((HID + OUT, HID), jnp.bfloat16)
    w_slab = w_slab.at[:HID, :L2].set(w1)
    w_slab = w_slab.at[HID:, :].set(w2)

    c1w = params["conv1_w"].reshape(2).astype(jnp.float32)
    c2w = params["conv2_w"].reshape(2).astype(jnp.float32)
    taps = jnp.stack([c1w[0], c1w[1], params["conv1_b"].reshape(())[()],
                      c2w[0], c2w[1], params["conv2_b"].reshape(())[()]]).astype(jnp.float32)

    misc = jnp.zeros((HID, 4), jnp.float32)
    misc = misc.at[:, 0].set(params["lin1_b"].astype(jnp.float32))
    misc = misc.at[:OUT, 1].set(params["lin2_b"].astype(jnp.float32))
    misc = misc.at[:6, 2].set(taps)
    return w_slab, misc


def conv_sigmoid_forward_lanes(xt, params, *, batch_tile=DEFAULT_TB):
    """Lane-native entry: xt is (6, B) f32, returns (5, B) f32 (no transposes)."""
    L, B = xt.shape
    assert L == L_IN
    tb, n_tiles, b_pad = _plan_tiles(B, batch_tile)

    xt = xt.astype(jnp.float32)
    if b_pad != B:
        # Padded lanes produce garbage after bias/ReLU; they are sliced off below.
        xt = jnp.pad(xt, ((0, 0), (0, b_pad - B)))

    w_slab, misc = _pack_params(params)

    out = pl.pallas_call(
        conv_sigmoid_kernel,
        out_shape=jax.ShapeDtypeStruct((OUT, b_pad), jnp.float32),
        grid=(n_tiles,),
        in_specs=[
            pl.BlockSpec((L_IN, tb), lambda i: (0, i)),        # x: pipelined batch tiles
            pl.BlockSpec((HID + OUT, HID), lambda i: (0, 0)),  # weight slab: resident
            pl.BlockSpec((HID, 4), lambda i: (0, 0)),          # bias/tap slab: resident
        ],
        out_specs=pl.BlockSpec((OUT, tb), lambda i: (0, i)),
        compiler_params=pltpu.CompilerParams(
            dimension_semantics=("parallel",),                 # shards tiles across v7x TCs
            vmem_limit_bytes=48 * 1024 * 1024,                 # covers v5e's 16 MiB scoped default
        ),
    )(xt, w_slab, misc)

    return out[:, :B]


def conv_sigmoid_forward(x, params, *, batch_tile=DEFAULT_TB):
    """PyTorch-layout entry: x (B, 1, 6) f32 -> (B, 1, 5) f32.

    The transpose to/from the lane-major layout is unavoidable for this API;
    callers that can keep data in (6, B)/(5, B) should use
    conv_sigmoid_forward_lanes directly to save two HBM passes.
    """
    B = x.shape[0]
    assert x.shape == (B, 1, L_IN)
    xt = x.reshape(B, L_IN).T                                   # (6, B)
    out_t = conv_sigmoid_forward_lanes(xt, params, batch_tile=batch_tile)
    return out_t.T.reshape(B, 1, OUT)


def init_params(key):
    """Deterministic init mimicking PyTorch's default U(-1/sqrt(fan_in), 1/sqrt(fan_in))."""
    ks = jax.random.split(key, 8)

    def u(k, shape, fan_in):
        bound = 1.0 / jnp.sqrt(float(fan_in))
        return jax.random.uniform(k, shape, jnp.float32, -bound, bound)

    return {
        # Conv1d(1, 1, kernel_size=2): weight (1,1,2), bias (1,)
        "conv1_w": u(ks[0], (1, 1, 2), 1 * 2),
        "conv1_b": u(ks[1], (1,), 1 * 2),
        "conv2_w": u(ks[2], (1, 1, 2), 1 * 2),
        "conv2_b": u(ks[3], (1,), 1 * 2),
        # Linear(4, 32): weight (32,4), bias (32,)
        "lin1_w": u(ks[4], (HID, 4), 4),
        "lin1_b": u(ks[5], (HID,), 4),
        # Linear(32, 5): weight (5,32), bias (5,)
        "lin2_w": u(ks[6], (OUT, HID), HID),
        "lin2_b": u(ks[7], (OUT,), HID),
    }


def reference_forward(x, params):
    """Pure-JAX f32 reference of the PyTorch forward for a sanity check."""
    B = x.shape[0]
    x2d = x.reshape(B, L_IN)
    w1 = params["conv1_w"].reshape(2)
    y = x2d[:, :-1] * w1[0] + x2d[:, 1:] * w1[1] + params["conv1_b"][0]
    y = jnp.maximum(y, 0.0)
    w2 = params["conv2_w"].reshape(2)
    z = y[:, :-1] * w2[0] + y[:, 1:] * w2[1] + params["conv2_b"][0]
    z = jnp.maximum(z, 0.0)
    h = z @ params["lin1_w"].T + params["lin1_b"]
    h = jnp.maximum(h, 0.0)
    o = h @ params["lin2_w"].T + params["lin2_b"]
    return jax.nn.sigmoid(o).reshape(B, 1, OUT)


if __name__ == "__main__":
    key = jax.random.PRNGKey(0)
    k_x, k_p, k_x2 = jax.random.split(key, 3)
    params = init_params(k_p)

    # Kernel uses single-pass bf16 MXU matmuls + approx reciprocal (intentional,
    # per perf guidance), so the comparison against the f32 reference uses a
    # correspondingly relaxed tolerance (sigmoid outputs are in (0, 1)).
    TOL = 2e-2

    # Small shape from the module spec: (B, C=1, L=6), B=2.
    B = 2
    x = jax.random.normal(k_x, (B, 1, L_IN), jnp.float32)
    out = jax.block_until_ready(conv_sigmoid_forward(x, params))
    ref = reference_forward(x, params)
    assert out.shape == (B, 1, OUT)
    assert jnp.allclose(out, ref, atol=TOL), float(jnp.max(jnp.abs(out - ref)))

    # Exercise the multi-tile grid + batch padding paths:
    #  - default plan forces >= 2 tiles (v7x dual-TC sharding),
    #  - explicit 128-lane tiles give 3 grid steps.
    B2 = 260
    x2 = jax.random.normal(k_x2, (B2, 1, L_IN), jnp.float32)
    ref2 = reference_forward(x2, params)
    out2a = jax.block_until_ready(conv_sigmoid_forward(x2, params))
    out2b = jax.block_until_ready(conv_sigmoid_forward(x2, params, batch_tile=128))
    assert out2a.shape == (B2, 1, OUT) and out2b.shape == (B2, 1, OUT)
    assert jnp.allclose(out2a, ref2, atol=TOL), float(jnp.max(jnp.abs(out2a - ref2)))
    assert jnp.allclose(out2b, ref2, atol=TOL), float(jnp.max(jnp.abs(out2b - ref2)))

    print("KERNEL_OK")
</pallas_src>

<mosaic_0001>
module attributes {stable_mosaic.version = 11 : i64} {
  func.func @conv_sigmoid_kernel(%arg0: i32, %arg1: memref<6x128xf32, #tpu.memory_space<vmem>>, %arg2: memref<37x32xbf16, #tpu.memory_space<vmem>>, %arg3: memref<32x4xf32, #tpu.memory_space<vmem>>, %arg4: memref<5x128xf32, #tpu.memory_space<vmem>>) attributes {dimension_semantics = [#tpu.dimension_semantics<parallel>], iteration_bounds = array<i64: 1>, scalar_prefetch = 0 : i64, scratch_operands = 0 : i64, tpu.core_type = #tpu.core_type<tc>, window_params = [{transform_indices = @transform_0, window_bounds = array<i64: 6, 128>}, {pipeline_mode = #tpu.pipeline_mode<synchronous>, transform_indices = @transform_1, window_bounds = array<i64: 37, 32>}, {pipeline_mode = #tpu.pipeline_mode<synchronous>, transform_indices = @transform_2, window_bounds = array<i64: 32, 4>}, {transform_indices = @transform_3, window_bounds = array<i64: 5, 128>}]} {
    %c0 = arith.constant 0 : index
    %c0_0 = arith.constant 0 : index
    %0 = vector.load %arg1[%c0, %c0_0] : memref<6x128xf32, #tpu.memory_space<vmem>>, vector<6x128xf32>
    %c0_1 = arith.constant 0 : index
    %c0_2 = arith.constant 0 : index
    %1 = vector.load %arg3[%c0_1, %c0_2] : memref<32x4xf32, #tpu.memory_space<vmem>>, vector<32x4xf32>
    %2 = vector.extract_strided_slice %1 {offsets = [0, 0], sizes = [32, 1], strides = [1, 1]} : vector<32x4xf32> to vector<32x1xf32>
    %3 = vector.extract_strided_slice %1 {offsets = [0, 1], sizes = [5, 1], strides = [1, 1]} : vector<32x4xf32> to vector<5x1xf32>
    %4 = vector.extract_strided_slice %1 {offsets = [0, 2], sizes = [1, 1], strides = [1, 1]} : vector<32x4xf32> to vector<1x1xf32>
    %5 = vector.extract_strided_slice %1 {offsets = [1, 2], sizes = [1, 1], strides = [1, 1]} : vector<32x4xf32> to vector<1x1xf32>
    %6 = vector.extract_strided_slice %1 {offsets = [2, 2], sizes = [1, 1], strides = [1, 1]} : vector<32x4xf32> to vector<1x1xf32>
    %7 = vector.extract_strided_slice %1 {offsets = [3, 2], sizes = [1, 1], strides = [1, 1]} : vector<32x4xf32> to vector<1x1xf32>
    %8 = vector.extract_strided_slice %1 {offsets = [4, 2], sizes = [1, 1], strides = [1, 1]} : vector<32x4xf32> to vector<1x1xf32>
    %9 = vector.extract_strided_slice %1 {offsets = [5, 2], sizes = [1, 1], strides = [1, 1]} : vector<32x4xf32> to vector<1x1xf32>
    %10 = vector.extract_strided_slice %0 {offsets = [0, 0], sizes = [5, 128], strides = [1, 1]} : vector<6x128xf32> to vector<5x128xf32>
    %11 = vector.broadcast %4 : vector<1x1xf32> to vector<5x128xf32>
    %12 = arith.mulf %11, %10 : vector<5x128xf32>
    %13 = vector.extract_strided_slice %0 {offsets = [1, 0], sizes = [5, 128], strides = [1, 1]} : vector<6x128xf32> to vector<5x128xf32>
    %14 = vector.broadcast %5 : vector<1x1xf32> to vector<5x128xf32>
    %15 = arith.mulf %14, %13 : vector<5x128xf32>
    %16 = arith.addf %12, %15 : vector<5x128xf32>
    %17 = vector.broadcast %6 : vector<1x1xf32> to vector<5x128xf32>
    %18 = arith.addf %16, %17 : vector<5x128xf32>
    %cst = arith.constant 0.000000e+00 : f32
    %19 = vector.broadcast %cst : f32 to vector<5x128xf32>
    %20 = arith.maximumf %18, %19 : vector<5x128xf32>
    %21 = vector.extract_strided_slice %20 {offsets = [0, 0], sizes = [4, 128], strides = [1, 1]} : vector<5x128xf32> to vector<4x128xf32>
    %22 = vector.broadcast %7 : vector<1x1xf32> to vector<4x128xf32>
    %23 = arith.mulf %22, %21 : vector<4x128xf32>
    %24 = vector.extract_strided_slice %20 {offsets = [1, 0], sizes = [4, 128], strides = [1, 1]} : vector<5x128xf32> to vector<4x128xf32>
    %25 = vector.broadcast %8 : vector<1x1xf32> to vector<4x128xf32>
    %26 = arith.mulf %25, %24 : vector<4x128xf32>
    %27 = arith.addf %23, %26 : vector<4x128xf32>
    %28 = vector.broadcast %9 : vector<1x1xf32> to vector<4x128xf32>
    %29 = arith.addf %27, %28 : vector<4x128xf32>
    %cst_3 = arith.constant 0.000000e+00 : f32
    %30 = vector.broadcast %cst_3 : f32 to vector<4x128xf32>
    %31 = arith.maximumf %29, %30 : vector<4x128xf32>
    %c0_4 = arith.constant 0 : index
    %c0_5 = arith.constant 0 : index
    %32 = vector.load %arg2[%c0_4, %c0_5] : memref<37x32xbf16, #tpu.memory_space<vmem>>, vector<37x32xbf16>
    %33 = vector.extract_strided_slice %32 {offsets = [0, 0], sizes = [32, 4], strides = [1, 1]} : vector<37x32xbf16> to vector<32x4xbf16>
    %34 = vector.extract_strided_slice %32 {offsets = [32, 0], sizes = [5, 32], strides = [1, 1]} : vector<37x32xbf16> to vector<5x32xbf16>
    %35 = arith.truncf %31 : vector<4x128xf32> to vector<4x128xbf16>
    %cst_6 = arith.constant dense<0.000000e+00> : vector<32x128xf32>
    %36 = tpu.matmul %33, %35, %cst_6 {dimension_numbers = #tpu.dot_dimension_numbers<[1], [0], [0], [1], [0, 0, 1, 1], [], []>} : vector<32x4xbf16>, vector<4x128xbf16>, vector<32x128xf32> -> vector<32x128xf32>
    %37 = vector.broadcast %2 : vector<32x1xf32> to vector<32x128xf32>
    %38 = arith.addf %36, %37 : vector<32x128xf32>
    %cst_7 = arith.constant 0.000000e+00 : f32
    %39 = vector.broadcast %cst_7 : f32 to vector<32x128xf32>
    %40 = arith.maximumf %38, %39 : vector<32x128xf32>
    %41 = arith.truncf %40 : vector<32x128xf32> to vector<32x128xbf16>
    %cst_8 = arith.constant dense<0.000000e+00> : vector<5x128xf32>
    %42 = tpu.matmul %34, %41, %cst_8 {dimension_numbers = #tpu.dot_dimension_numbers<[1], [0], [0], [1], [0, 0, 1, 1], [], []>} : vector<5x32xbf16>, vector<32x128xbf16>, vector<5x128xf32> -> vector<5x128xf32>
    %43 = vector.broadcast %3 : vector<5x1xf32> to vector<5x128xf32>
    %44 = arith.addf %42, %43 : vector<5x128xf32>
    %cst_9 = arith.constant 0.000000e+00 : f32
    %45 = vector.broadcast %cst_9 : f32 to vector<5x128xf32>
    %46 = arith.subf %45, %44 : vector<5x128xf32>
    %47 = math.exp %46 : vector<5x128xf32>
    %cst_10 = arith.constant 1.000000e+00 : f32
    %48 = vector.broadcast %cst_10 : f32 to vector<5x128xf32>
    %49 = arith.addf %48, %47 : vector<5x128xf32>
    %50 = tpu.reciprocal %49 {approx = true} : vector<5x128xf32> -> vector<5x128xf32>
    %c0_11 = arith.constant 0 : index
    %c0_12 = arith.constant 0 : index
    %51 = vector.load %arg4[%c0_11, %c0_12] : memref<5x128xf32, #tpu.memory_space<vmem>>, vector<5x128xf32>
    tpu.vector_store %arg4[%c0_11, %c0_12], %50 {strides = array<i32>} : memref<5x128xf32, #tpu.memory_space<vmem>>, vector<5x128xf32>,
    return
  }
  func.func @transform_0(%arg0: i32) -> (i32, i32) {
    %c0_i32 = arith.constant 0 : i32
    %c0_i32_0 = arith.constant 0 : i32
    return %c0_i32, %arg0 : i32, i32
  }
  func.func @transform_1(%arg0: i32) -> (i32, i32) {
    %c0_i32 = arith.constant 0 : i32
    %c0_i32_0 = arith.constant 0 : i32
    %c0_i32_1 = arith.constant 0 : i32
    return %c0_i32, %c0_i32_0 : i32, i32
  }
  func.func @transform_2(%arg0: i32) -> (i32, i32) {
    %c0_i32 = arith.constant 0 : i32
    %c0_i32_0 = arith.constant 0 : i32
    %c0_i32_1 = arith.constant 0 : i32
    return %c0_i32, %c0_i32_0 : i32, i32
  }
  func.func @transform_3(%arg0: i32) -> (i32, i32) {
    %c0_i32 = arith.constant 0 : i32
    %c0_i32_0 = arith.constant 0 : i32
    return %c0_i32, %arg0 : i32, i32
  }
}

</mosaic_0001>

<bundles_post_ra>
// kernel: tpu_custom_call.1
= control target key start
LH: loop header
LB: loop body
LE: loop exit
PB: predicated region body
PF: predicated region fallthrough
CT: control target
= control target key end

     0   :  { %s320_s14 = smov 126   ;;  %s394_s0 = inlined_call_operand.vmem [shape: f32[6,128], index: 0, kind: input, shape index: {}]   ;;  %s395_s1 = inlined_call_operand.vmem [shape: bf16[37,32], index: 1, kind: input, shape index: {}]   ;;  %s396_s2 = inlined_call_operand.vmem [shape: f32[32,4], index: 2, kind: input, shape index: {}]   ;;  %s397_s3 = inlined_call_operand.hbm [shape: f32[5,128], index: 3, kind: output, shape index: {}]  }
   0x1   :  { %v349_v0 = vld [vmem:[%s396_s2] sm:$0xff] }
   0x2   :  { %22 = vrot.lane.b32.xlu0 %v349_v0, %s320_s14  ;;  %v28_v1 = vrot.slane %v349_v0, 1  ;;  %v39_v2 = vrot.slane %v349_v0, 2  ;;  %v47_v3 = vrot.slane %v349_v0, 3 }
   0x4   :  { %40 = vrot.lane.b32.xlu1 %v39_v2, %s320_s14 }
   0x5   :  { %8 = vsyncpa [#allocation3], 0  ;;  %v54_v4 = vrot.slane %v349_v0, 4  ;;  %v65_v5 = vrot.slane %v349_v0, 5  ;;  %v290_v6 = vld [vmem:[%s395_s1] sm:$0xff]   ;;  %vm108_vm0 = vcmask 31744  }
   0x6   :  { %29 = vrot.lane.b32.xlu0 %v28_v1, %s320_s14  ;;  %255 = vmatprep.mubr.msk.bf16.mxu0 %vm108_vm0, %v290_v6  ;;  %v18_v7 = vld [vmem:[%s396_s2 + $0x8] sm:$0xff]  ;;  %v321_v8 = vmov 0   ;;  %v19_v9 = vld [vmem:[%s396_s2 + $0x10] sm:$0xff]  ;;  %v20_v10 = vld [vmem:[%s396_s2 + $0x18] sm:$0xff]  ;;  %vm115_vm1 = vcmask 1041408   ;;  %v322_v39 = vmov 0.0  }
   0x7   :  { %287 = vset.pattern.permute.xlu1 %v321_v8  ;;  %286 = vset.pattern.permute.xlu0 %v321_v8  ;;  %v16_v17 = vld [vmem:[%s394_s0] sm:$0x3f]  ;;  %v291_v38 = vld [vmem:[%s395_s1 + $0x8] sm:$0xff]   ;;  %vm323_vm2 = vmmov 0   ;;  %v324_v40 = vmov 1   ;;  %vm178_vm3 = vcmask 261120  }
   0x8   :  { %48 = vrot.lane.b32.xlu1 %v47_v3, %s320_s14  ;;  %259 = vmatprep.subr.bf16.mxu1 %v322_v39  ;;  %v77_v59 = vld [vmem:[%s395_s1 + $0x10] sm:$0x7]  ;;  %s325_s6 = smov [#allocation2]  }
   0x9   :  { %263 = vmatprep.mubr.msk.bf16.mxu1 %vm323_vm2, %v322_v39  ;;  %s234_s7 = sshll.u32 %s325_s6, 4  ;;  %s235_s7 = int_to_ptr.vmem [resolvable:$true] %s234_s7 }
   0xa   :  { %55 = vrot.lane.b32.xlu0 %v54_v4, %s320_s14  ;;  %s296_s1 = scalar_lea.vmem %s235_s7, 128  ;;  %p301_p1 = scmp.lt.s32.totalorder %s235_s7, %s235_s7 }
   0xb   :  { %p297_p0 = scmp.ne.s32.totalorder %s235_s7, %s296_s1  ;;  %p302_p2 = scmp.lt.s32.totalorder %s296_s1, %s296_s1 }
   0xc   :  { %66 = vrot.lane.b32.xlu1 %v65_v5, %s320_s14 }
   0xd   :  { %p303_p3 = por %p302_p2, %p301_p1 }
   0xe   :  { %80 = vperm.xlu0 %286, %v349_v0  }
   0xf   :  { %p304_p4 = pnand %p303_p3, %p297_p0 }
  0x10   :  { %85 = vperm.xlu1 %287, %v18_v7  }
  0x12   :  { %95 = vperm.xlu0 %286, %v20_v10  }
  0x14   :  { %90 = vperm.xlu1 %287, %v19_v9  }
  0x16   :  { %289 = vset.pattern.permute.xlu0 %v324_v40 }
  0x18   :  { %288 = vset.pattern.permute.xlu1 %v324_v40 }
  0x19   :  { %175 = vperm.xlu1 %288, %v349_v0  }
  0x74   :  { %v23_v11 = vpop.permute.xlu0 %22 }
  0x75   :  { %268 = vpush %v23_v11 }
  0x76   :  { %v41_v12 = vpop.permute.xlu1 %40 }
  0x78   :  { %v30_v13 = vpop.permute.xlu0 %29 }
  0x79   :  { %270 = vpush %v30_v13 }
  0x7a   :  { %272 = vpush %v41_v12  ;;  %v49_v14 = vpop.permute.xlu1 %48 }
  0x7b   :  { %274 = vpush %v49_v14 }
  0x7c   :  { %v56_v15 = vpop.permute.xlu0 %55 }
  0x7d   :  { %276 = vpush %v56_v15 }
  0x7e   :  { %v67_v16 = vpop.permute.xlu1 %66 }
  0x7f   :  { %278 = vpush %v67_v16 }
  0x8d   :  { %v81_v42 = vpop.permute.xlu0 %80 }
  0x8f   :  { %v86_v41 = vpop.permute.xlu1 %85 }
  0x91   :  { %v96_v45 = vpop.permute.xlu0 %95 }
  0x93   :  { %v91_v43 = vpop.permute.xlu1 %90 }
  0x98   :  { %v176_v60 = vpop.permute.xlu1 %175 }
  0xa6   :  { %s269_s23 = spop %268 }
  0xa7   :  { %v25_v18 = vstv %s269_s23 }
  0xa8   :  { %v27_v21 = vmul.f32 %v25_v18, %v16_v17 }
  0xaa   :  { %s271_s24 = spop %270 }
  0xab   :  { %v32_v19 = vstv %s271_s24  ;;  %s273_s2 = spop %272 }
  0xac   :  { %v34_v20 = vmul.f32 %v32_v19, %v16_v17  ;;  %s275_s27 = spop %274  ;;  %v43_v23 = vstv %s273_s2 }
  0xad   :  { %v51_v28 = vstv %s275_s27 }
  0xae   :  { %v36_v22 = vrot.slane %v34_v20, 1  ;;  %s277_s28 = spop %276 }
  0xaf   :  { %v58_v26 = vstv %s277_s28 }
  0xb0   :  { %v38_v24 = vadd.f32 %v36_v22, %v27_v21  ;;  %s279_s29 = spop %278 }
  0xb1   :  { %v69_v32 = vstv %s279_s29 }
  0xb2   :  { %v45_v25 = vadd.f32 %v43_v23, %v38_v24 }
  0xb4   :  { %v46_v27 = vmax.f32 %v45_v25, 0.0 }
  0xb6   :  { %v60_v29 = vmul.f32 %v58_v26, %v46_v27  ;;  %v53_v30 = vmul.f32 %v51_v28, %v46_v27 }
  0xb8   :  { %v62_v31 = vrot.slane %v60_v29, 1 }
  0xba   :  { %v64_v33 = vadd.f32 %v62_v31, %v53_v30 }
  0xbc   :  { %v71_v34 = vadd.f32 %v69_v32, %v64_v33 }
  0xbe   :  { %v72_v35 = vmax.f32 %v71_v34, 0.0 }
  0xc0   :  { %v78_v36 = vpack.c.bf16 %v72_v35, %v72_v35 }
  0xc2   :  { %267 = vmatprep.subr.msk.bf16.mxu0 %vm115_vm1, %v78_v36  ;;  %v117_v37 = vsel %vm115_vm1, %v78_v36, 0 }
  0xc3   :  { %254 = vmatpush3.bf16.msra.mxu0 %v117_v37 }
  0xc6   :  { %256 = vmatmul.mubr.msk.bf16.vlgmr.msra.gmra.mrb[0].mxu0 %vm108_vm0, %v291_v38 }
 0x199   :  { %v257_v44 = vpop.f32.mrb[0].mxu0 }
 0x19a   :  { %v162_v46 = vadd.f32 %v257_v44, %v91_v43  ;;  %v153_v47 = vpop.f32.mrb[1].mxu0 }
 0x19b   :  { %v154_v48 = vadd.f32 %v153_v47, %v81_v42  ;;  %v258_v49 = vpop.f32.mrb[2].mxu0 }
 0x19c   :  { %v165_v50 = vadd.f32 %v258_v49, %v96_v45  ;;  %v156_v51 = vpop.f32.mrb[3].mxu0  ;;  %v170_v53 = vmax.f32 %v162_v46, 0.0 }
 0x19d   :  { %v157_v52 = vadd.f32 %v156_v51, %v86_v41  ;;  %v168_v55 = vmax.f32 %v154_v48, 0.0 }
 0x19e   :  { %v171_v54 = vmax.f32 %v165_v50, 0.0 }
 0x19f   :  { %v169_v56 = vmax.f32 %v157_v52, 0.0 }
 0x1a0   :  { %v173_v57 = vpack.c.bf16 %v171_v54, %v170_v53 }
 0x1a1   :  { %v172_v58 = vpack.c.bf16 %v169_v56, %v168_v55 }
 0x1a3   :  { %260 = vmatpush3.bf16.msra.mxu1 %v172_v58 }
 0x1a4   :  { %261 = vmatprep.subr.bf16.mxu1 %v322_v39 }
 0x1a7   :  { %262 = vmatpush3.bf16.msra.mxu1 %v173_v57 }
 0x1aa   :  { %264 = vmatmul.mubr.msk.bf16.vlgmr.msra.gmra.mrb[0].mxu1 %vm178_vm3, %v77_v59 }
 0x27d   :  { %v216_v61 = vpop.f32.mrb[0].mxu1 }
 0x27e   :  { %v217_v62 = vadd.f32 %v216_v61, %v176_v60  ;;  %v265_v63 = vpop.f32.mrb[1].mxu1 }
 0x27f   :  { %v219_v0 = vpop.f32.mrb[2].mxu1 }
 0x280   :  { %v222_v1 = vsub.f32 0.0, %v217_v62  ;;  %v266_v2 = vpop.f32.mrb[3].mxu1 }
 0x282   :  { %v223_v3 = vmul.f32 1.442695, %v222_v1 }
 0x284   :  { %292 = vpow2.f32 %v223_v3 }
 0x28e   :  { %v293_v4 = vpop.eup %292 }
 0x28f   :  { %v225_v5 = vadd.f32 1.0, %v293_v4 }
 0x291   :  { %294 = vrcp.f32 %v225_v5 }
 0x29b   :  { %v295_v6 = vpop.eup %294 }
 0x29c   :  { %227 = vst [vmem:[#allocation2] sm:$0x1f] %v295_v6 }
 0x29d   :  { %307 = shalt.err (!%p304_p4)
}
 0x29e   :  { %s308_s10 = scalar_lea.hbm %s397_s3, 128 }
 0x29f   :  { %p309_p5 = scmp.ne.s32.totalorder %s397_s3, %s308_s10  ;;  %p312_p6 = scmp.lt.u32.totalorder %s308_s10, %s397_s3 }
 0x2a1   :  { %p314_p7 = pnand %p312_p6, %p309_p5 }
 0x2a3   :  { %317 = shalt.err (!%p314_p7)
}
 0x2a4   :  { %237 = dma.vmem_to_hbm [thread:$0]  %s235_s7, 128, %s397_s3, [#allocation3]  }
 0x2a5   :  { %318 = dma.done.wait [#allocation3], 128  }
 0x2a6   :  { %319 = vsyncadd [#allocation3], 4294967168 }
 0x2a7   :  { %241 = vsyncpa [#allocation3], 1 }

</bundles_post_ra>
